<compile_context>
chip_gen: v5e
topology: v5e:2x2
jax: 0.10.0
libtpu: 0.0.40
codegen_flags: <defaults>
</compile_context>

<pallas_src>
import functools

import jax
import jax.numpy as jnp
import numpy as np
from jax.experimental import pallas as pl
from jax.experimental.pallas import tpu as pltpu


# --------------------------------------------------------------------------- #
# Pass 1: fused 1x1-conv projections (per batch).
# --------------------------------------------------------------------------- #
def _proj_kernel(x1_ref, x2_ref,
                 wqk1_ref, wqk2_ref, bqk_ref,
                 wv1_ref, bv1_ref, wv2_ref, bv2_ref,
                 q_ref, k_ref, v_ref, *, dq):
    mdt = q_ref.dtype                                    # matmul operand dtype
    x1 = x1_ref[0].astype(mdt)                           # (C, N)
    x2 = x2_ref[0].astype(mdt)                           # (C, N)

    # Fused query/key projection, split over the two input halves:
    #   qk (2dq, N) = Wqk[:, :C] @ x1 + Wqk[:, C:] @ x2 + bqk
    qk = (jnp.dot(wqk1_ref[...].astype(mdt), x1,
                  preferred_element_type=jnp.float32)
          + jnp.dot(wqk2_ref[...].astype(mdt), x2,
                    preferred_element_type=jnp.float32)
          + bqk_ref[...])
    q_ref[0] = qk[:dq, :].astype(mdt)                    # (dq, N) lane-dense
    k_ref[0] = qk[dq:, :].astype(mdt)                    # (dq, N)

    v1 = (jnp.dot(wv1_ref[...].astype(mdt), x1,
                  preferred_element_type=jnp.float32) + bv1_ref[...])
    v2 = (jnp.dot(wv2_ref[...].astype(mdt), x2,
                  preferred_element_type=jnp.float32) + bv2_ref[...])
    v_ref[0] = jnp.concatenate([v1, v2], axis=0).astype(mdt)   # (2C, N)


# --------------------------------------------------------------------------- #
# Pass 2: attention over pixels (per batch x query tile).
# --------------------------------------------------------------------------- #
def _attn_kernel(q_ref, k_ref, v_ref, x1_ref, x2_ref,
                 out1_ref, out2_ref, attn_ref, *, c):
    q = q_ref[0]                                         # (dq, tq)  bf16
    k = k_ref[0]                                         # (dq, N)   bf16

    # energy[i, j] = sum_d q[d, i] * k[d, j]   (contract dq, dim 0 of both).
    energy = jax.lax.dot_general(q, k, (((0,), (0,)), ((), ())),
                                 preferred_element_type=jnp.float32)  # (tq, N)

    # Softmax over keys (lane axis) in f32; exact reciprocal (only tq values)
    # so the *returned* attention rows sum to 1 to f32 accuracy.
    e_max = jnp.max(energy, axis=-1, keepdims=True)
    p = jnp.exp(energy - e_max)
    inv_l = 1.0 / jnp.sum(p, axis=-1, keepdims=True)
    attn = p * inv_l                                     # (tq, N) f32
    attn_ref[0] = attn.astype(attn_ref.dtype)

    # out[ch, i] = sum_j v[ch, j] * attn[i, j]  — one fused (2C, tq) matmul.
    out = jax.lax.dot_general(v_ref[0], attn.astype(v_ref.dtype),
                              (((1,), (1,)), ((), ())),
                              preferred_element_type=jnp.float32)     # (2C, tq)

    out1_ref[0] = (out[:c, :] + x1_ref[0]).astype(out1_ref.dtype)
    out2_ref[0] = (out[c:, :] + x2_ref[0]).astype(out2_ref.dtype)


# --------------------------------------------------------------------------- #
# Host-side helpers.
# --------------------------------------------------------------------------- #
def _vmem_capacity_bytes():
    """Physical per-core VMEM; conservative fallback if the query fails."""
    try:
        return int(pltpu.get_tpu_info().vmem_capacity_bytes)
    except Exception:  # pragma: no cover - older runtimes
        return 64 * 1024 * 1024


def _candidate_tqs(n, tq_max):
    """Query-tile candidates (descending): 128-multiples dividing n (keeps the
    attention-output store lane-dense), else the full pixel count."""
    tq_max = (tq_max // 128) * 128
    if n % 128 != 0 or tq_max < 128:
        return [n]
    return [t for t in range(min(tq_max, n), 0, -128) if n % t == 0]


def spatial_cross_attention(x1, x2, params, *, tq_max=None,
                            matmul_dtype=jnp.bfloat16,
                            attn_dtype=jnp.bfloat16):
    """x1, x2: (B, C, W, H) float32. Returns (out1, out2, attention)."""
    b, c, w, h = x1.shape
    n = w * h
    dq = params["wq"].shape[0]
    mm_bytes = np.dtype(matmul_dtype).itemsize
    attn_bytes = np.dtype(attn_dtype).itemsize

    # Generation-aware VMEM budget (v5e/v6e: 128 MiB, v7x: 64 MiB per core).
    vmem_phys = _vmem_capacity_bytes()
    vmem_cap = vmem_phys * 3 // 4
    if tq_max is None:
        tq_max = 512 if vmem_phys >= 96 * 1024 * 1024 else 256

    # NCHW -> (B, C, N): pure reshape; channels on sublanes, pixels on lanes.
    x1f = x1.reshape(b, c, n)
    x2f = x2.reshape(b, c, n)

    # Fuse the tiny q/k projections into one matmul, split by input half.
    wqk = jnp.concatenate([params["wq"], params["wk"]], axis=0)    # (2dq, 2C)
    wqk_a, wqk_b = wqk[:, :c], wqk[:, c:]
    bqk = jnp.concatenate([params["bq"], params["bk"]], axis=0)    # (2dq, 1)

    def wfull(arr):
        nd = arr.ndim
        return pl.BlockSpec(arr.shape, lambda bi, _nd=nd: (0,) * _nd)

    # ---------------- pass 1: projections ---------------- #
    proj_est = (2 * 2 * c * n * 4                       # x1f, x2f blocks (dbl buf)
                + 2 * (2 * dq + 2 * c) * n * mm_bytes   # q/k/v output blocks
                + (2 * dq + 2 * c) * n * 4)             # f32 temporaries
    proj_vmem = int(min(max(proj_est * 3 // 2, 32 * 1024 * 1024), vmem_cap))

    q, k, v = pl.pallas_call(
        functools.partial(_proj_kernel, dq=dq),
        out_shape=(jax.ShapeDtypeStruct((b, dq, n), matmul_dtype),
                   jax.ShapeDtypeStruct((b, dq, n), matmul_dtype),
                   jax.ShapeDtypeStruct((b, 2 * c, n), matmul_dtype)),
        grid_spec=pltpu.PrefetchScalarGridSpec(
            num_scalar_prefetch=0,
            grid=(b,),
            in_specs=[pl.BlockSpec((1, c, n), lambda bi: (bi, 0, 0)),
                      pl.BlockSpec((1, c, n), lambda bi: (bi, 0, 0)),
                      wfull(wqk_a), wfull(wqk_b), wfull(bqk),
                      wfull(params["wv1"]), wfull(params["bv1"]),
                      wfull(params["wv2"]), wfull(params["bv2"])],
            out_specs=(pl.BlockSpec((1, dq, n), lambda bi: (bi, 0, 0)),
                       pl.BlockSpec((1, dq, n), lambda bi: (bi, 0, 0)),
                       pl.BlockSpec((1, 2 * c, n), lambda bi: (bi, 0, 0)))),
        compiler_params=pltpu.CompilerParams(
            dimension_semantics=("parallel",),
            vmem_limit_bytes=proj_vmem),
    )(x1f, x2f, wqk_a, wqk_b, bqk,
      params["wv1"], params["bv1"], params["wv2"], params["bv2"])

    # ---------------- pass 2: attention ---------------- #
    def _est(tq):
        return (2 * dq * tq * mm_bytes              # q tile (dbl buf)
                + 2 * dq * n * mm_bytes             # k (re-fetched per batch only)
                + 2 * 2 * c * n * mm_bytes          # fused v
                + 2 * 2 * c * tq * 4                # x residual tiles
                + 2 * 2 * c * tq * 4                # out1/out2 blocks
                + 2 * tq * n * attn_bytes           # attention output block
                + 16 * tq * n)                      # f32 softmax temporaries

    cands = _candidate_tqs(n, tq_max)
    tq = next((t for t in cands if _est(t) <= vmem_cap), cands[-1])
    assert n % tq == 0
    n_qt = n // tq
    attn_vmem = int(min(max(_est(tq) * 3 // 2, 32 * 1024 * 1024), vmem_cap))

    cost = pl.CostEstimate(
        flops=int(b * (2 * n * n * (dq + 2 * c) + 4 * n * n)),
        transcendentals=int(b * n * n),
        bytes_accessed=int(b * n * n * attn_bytes
                           + b * (2 * dq + 2 * c) * n * mm_bytes
                           + 6 * b * c * n * 4))

    out_shape = (
        jax.ShapeDtypeStruct((b, c, n), jnp.float32),
        jax.ShapeDtypeStruct((b, c, n), jnp.float32),
        jax.ShapeDtypeStruct((b, n, n), attn_dtype),
    )

    out1f, out2f, attn = pl.pallas_call(
        functools.partial(_attn_kernel, c=c),
        out_shape=out_shape,
        grid_spec=pltpu.PrefetchScalarGridSpec(
            num_scalar_prefetch=0,
            grid=(b, n_qt),
            in_specs=[
                pl.BlockSpec((1, dq, tq), lambda bi, qi: (bi, 0, qi)),      # q
                pl.BlockSpec((1, dq, n), lambda bi, qi: (bi, 0, 0)),        # k
                pl.BlockSpec((1, 2 * c, n), lambda bi, qi: (bi, 0, 0)),     # v
                pl.BlockSpec((1, c, tq), lambda bi, qi: (bi, 0, qi)),       # x1 res
                pl.BlockSpec((1, c, tq), lambda bi, qi: (bi, 0, qi)),       # x2 res
            ],
            out_specs=(
                pl.BlockSpec((1, c, tq), lambda bi, qi: (bi, 0, qi)),
                pl.BlockSpec((1, c, tq), lambda bi, qi: (bi, 0, qi)),
                pl.BlockSpec((1, tq, n), lambda bi, qi: (bi, qi, 0)),
            )),
        compiler_params=pltpu.CompilerParams(
            # Every (batch, query-tile) step is independent -> both axes are
            # megacore-shardable (covers B == 1 on multi-core chips).
            dimension_semantics=("parallel", "parallel"),
            vmem_limit_bytes=attn_vmem),
        cost_estimate=cost,
    )(q, k, v, x1f, x2f)

    # (B, C, N) -> NCHW: pure reshape, no transpose.
    return out1f.reshape(b, c, w, h), out2f.reshape(b, c, w, h), attn


# --------------------------------------------------------------------------- #
# Parameters / reference.
# --------------------------------------------------------------------------- #
def init_params(key, in_dim):
    """Deterministic init matching the nn.Conv2d 1x1 shapes.
    Weights are stored channels-first as (Cout, Cin) (== conv weight[:, :, 0, 0]),
    biases as (Cout, 1)."""
    reduction = 16
    dq = max(in_dim // reduction, 1)
    keys = jax.random.split(key, 8)

    def w_init(k, cout, cin):
        bound = 1.0 / np.sqrt(cin)
        return jax.random.uniform(k, (cout, cin), jnp.float32, -bound, bound)

    def b_init(k, cout, cin):
        bound = 1.0 / np.sqrt(cin)
        return jax.random.uniform(k, (cout, 1), jnp.float32, -bound, bound)

    return {
        "wq": w_init(keys[0], dq, 2 * in_dim), "bq": b_init(keys[1], dq, 2 * in_dim),
        "wk": w_init(keys[2], dq, 2 * in_dim), "bk": b_init(keys[3], dq, 2 * in_dim),
        "wv1": w_init(keys[4], in_dim, in_dim), "bv1": b_init(keys[5], in_dim, in_dim),
        "wv2": w_init(keys[6], in_dim, in_dim), "bv2": b_init(keys[7], in_dim, in_dim),
    }


def reference_forward(x1, x2, p):
    """Pure-JAX reference mirroring the PyTorch forward, for validation."""
    b, c, w, h = x1.shape
    n = w * h
    x = jnp.concatenate([x1, x2], axis=1).reshape(b, 2 * c, n)

    def conv1x1(xf, W, bias):                   # xf (b, Cin, n), W (Cout, Cin)
        return jnp.einsum("oc,bcn->bon", W, xf) + bias[None, :, :]

    q = jnp.transpose(conv1x1(x, p["wq"], p["bq"]), (0, 2, 1))   # (b, n, dq)
    k = conv1x1(x, p["wk"], p["bk"])                             # (b, dq, n)
    energy = jnp.einsum("bnd,bdm->bnm", q, k)                    # (b, n, n)
    attn = jax.nn.softmax(energy, axis=-1)
    v1 = conv1x1(x1.reshape(b, c, n), p["wv1"], p["bv1"])
    v2 = conv1x1(x2.reshape(b, c, n), p["wv2"], p["bv2"])
    out1 = jnp.einsum("bcn,bmn->bcm", v1, attn).reshape(b, c, w, h) + x1
    out2 = jnp.einsum("bcn,bmn->bcm", v2, attn).reshape(b, c, w, h) + x2
    return out1, out2, attn


if __name__ == "__main__":
    in_dim = 32            # must be >= 16 (reduction_ratio=16 in the module)
    batch, width, height = 2, 16, 16   # N = 256 -> two 128-wide query tiles

    key = jax.random.PRNGKey(0)
    kx1, kx2, kp = jax.random.split(key, 3)
    x1 = jax.random.normal(kx1, (batch, in_dim, width, height), jnp.float32)
    x2 = jax.random.normal(kx2, (batch, in_dim, width, height), jnp.float32)
    params = init_params(kp, in_dim)

    out1, out2, attn = spatial_cross_attention(x1, x2, params, tq_max=128)
    jax.block_until_ready((out1, out2, attn))

    r1, r2, ra = reference_forward(x1, x2, params)
    # bf16 MXU operands + bf16 attention storage (f32 accumulation / f32
    # softmax) => relaxed tolerances.
    np.testing.assert_allclose(np.asarray(out1), np.asarray(r1), rtol=3e-2, atol=3e-2)
    np.testing.assert_allclose(np.asarray(out2), np.asarray(r2), rtol=3e-2, atol=3e-2)
    np.testing.assert_allclose(np.asarray(attn.astype(jnp.float32)), np.asarray(ra),
                               rtol=5e-2, atol=1e-2)

    print("KERNEL_OK")
</pallas_src>

<mosaic_0001>
module attributes {stable_mosaic.version = 11 : i64} {
  func.func @_proj_kernel(%arg0: i32, %arg1: memref<1x32x256xf32, #tpu.memory_space<vmem>>, %arg2: memref<1x32x256xf32, #tpu.memory_space<vmem>>, %arg3: memref<4x32xf32, #tpu.memory_space<vmem>>, %arg4: memref<4x32xf32, #tpu.memory_space<vmem>>, %arg5: memref<4x1xf32, #tpu.memory_space<vmem>>, %arg6: memref<32x32xf32, #tpu.memory_space<vmem>>, %arg7: memref<32x1xf32, #tpu.memory_space<vmem>>, %arg8: memref<32x32xf32, #tpu.memory_space<vmem>>, %arg9: memref<32x1xf32, #tpu.memory_space<vmem>>, %arg10: memref<1x2x256xbf16, #tpu.memory_space<vmem>>, %arg11: memref<1x2x256xbf16, #tpu.memory_space<vmem>>, %arg12: memref<1x64x256xbf16, #tpu.memory_space<vmem>>) attributes {dimension_semantics = [#tpu.dimension_semantics<parallel>], iteration_bounds = array<i64: 2>, scalar_prefetch = 0 : i64, scratch_operands = 0 : i64, tpu.core_type = #tpu.core_type<tc>, window_params = [{transform_indices = @transform_0, window_bounds = array<i64: 1, 32, 256>}, {transform_indices = @transform_1, window_bounds = array<i64: 1, 32, 256>}, {pipeline_mode = #tpu.pipeline_mode<synchronous>, transform_indices = @transform_2, window_bounds = array<i64: 4, 32>}, {pipeline_mode = #tpu.pipeline_mode<synchronous>, transform_indices = @transform_3, window_bounds = array<i64: 4, 32>}, {pipeline_mode = #tpu.pipeline_mode<synchronous>, transform_indices = @transform_4, window_bounds = array<i64: 4, 1>}, {pipeline_mode = #tpu.pipeline_mode<synchronous>, transform_indices = @transform_5, window_bounds = array<i64: 32, 32>}, {pipeline_mode = #tpu.pipeline_mode<synchronous>, transform_indices = @transform_6, window_bounds = array<i64: 32, 1>}, {pipeline_mode = #tpu.pipeline_mode<synchronous>, transform_indices = @transform_7, window_bounds = array<i64: 32, 32>}, {pipeline_mode = #tpu.pipeline_mode<synchronous>, transform_indices = @transform_8, window_bounds = array<i64: 32, 1>}, {transform_indices = @transform_9, window_bounds = array<i64: 1, 2, 256>}, {transform_indices = @transform_10, window_bounds = array<i64: 1, 2, 256>}, {transform_indices = @transform_11, window_bounds = array<i64: 1, 64, 256>}]} {
    %c0 = arith.constant 0 : index
    %c0_0 = arith.constant 0 : index
    %c0_1 = arith.constant 0 : index
    %0 = vector.load %arg1[%c0, %c0_0, %c0_1] : memref<1x32x256xf32, #tpu.memory_space<vmem>>, vector<1x32x256xf32>
    %1 = vector.shape_cast %0 : vector<1x32x256xf32> to vector<32x256xf32>
    %2 = arith.truncf %1 : vector<32x256xf32> to vector<32x256xbf16>
    %c0_2 = arith.constant 0 : index
    %c0_3 = arith.constant 0 : index
    %c0_4 = arith.constant 0 : index
    %3 = vector.load %arg2[%c0_2, %c0_3, %c0_4] : memref<1x32x256xf32, #tpu.memory_space<vmem>>, vector<1x32x256xf32>
    %4 = vector.shape_cast %3 : vector<1x32x256xf32> to vector<32x256xf32>
    %5 = arith.truncf %4 : vector<32x256xf32> to vector<32x256xbf16>
    %c0_5 = arith.constant 0 : index
    %c0_6 = arith.constant 0 : index
    %6 = vector.load %arg3[%c0_5, %c0_6] : memref<4x32xf32, #tpu.memory_space<vmem>>, vector<4x32xf32>
    %7 = arith.truncf %6 : vector<4x32xf32> to vector<4x32xbf16>
    %cst = arith.constant dense<0.000000e+00> : vector<4x256xf32>
    %8 = tpu.matmul %7, %2, %cst {dimension_numbers = #tpu.dot_dimension_numbers<[1], [0], [0], [1], [0, 0, 1, 1], [], []>} : vector<4x32xbf16>, vector<32x256xbf16>, vector<4x256xf32> -> vector<4x256xf32>
    %c0_7 = arith.constant 0 : index
    %c0_8 = arith.constant 0 : index
    %9 = vector.load %arg4[%c0_7, %c0_8] : memref<4x32xf32, #tpu.memory_space<vmem>>, vector<4x32xf32>
    %10 = arith.truncf %9 : vector<4x32xf32> to vector<4x32xbf16>
    %cst_9 = arith.constant dense<0.000000e+00> : vector<4x256xf32>
    %11 = tpu.matmul %10, %5, %cst_9 {dimension_numbers = #tpu.dot_dimension_numbers<[1], [0], [0], [1], [0, 0, 1, 1], [], []>} : vector<4x32xbf16>, vector<32x256xbf16>, vector<4x256xf32> -> vector<4x256xf32>
    %12 = arith.addf %8, %11 : vector<4x256xf32>
    %c0_10 = arith.constant 0 : index
    %c0_11 = arith.constant 0 : index
    %13 = vector.load %arg5[%c0_10, %c0_11] : memref<4x1xf32, #tpu.memory_space<vmem>>, vector<4x1xf32>
    %14 = vector.broadcast %13 : vector<4x1xf32> to vector<4x256xf32>
    %15 = arith.addf %12, %14 : vector<4x256xf32>
    %16 = vector.extract_strided_slice %15 {offsets = [0, 0], sizes = [2, 256], strides = [1, 1]} : vector<4x256xf32> to vector<2x256xf32>
    %17 = arith.truncf %16 : vector<2x256xf32> to vector<2x256xbf16>
    %c0_12 = arith.constant 0 : index
    %c0_13 = arith.constant 0 : index
    %c0_14 = arith.constant 0 : index
    %18 = vector.load %arg10[%c0_12, %c0_13, %c0_14] : memref<1x2x256xbf16, #tpu.memory_space<vmem>>, vector<1x2x256xbf16>
    %19 = vector.shape_cast %18 : vector<1x2x256xbf16> to vector<2x256xbf16>
    %20 = vector.shape_cast %17 : vector<2x256xbf16> to vector<1x2x256xbf16>
    tpu.vector_store %arg10[%c0_12, %c0_13, %c0_14], %20 {strides = array<i32>} : memref<1x2x256xbf16, #tpu.memory_space<vmem>>, vector<1x2x256xbf16>,
    %21 = vector.extract_strided_slice %15 {offsets = [2, 0], sizes = [2, 256], strides = [1, 1]} : vector<4x256xf32> to vector<2x256xf32>
    %22 = arith.truncf %21 : vector<2x256xf32> to vector<2x256xbf16>
    %c0_15 = arith.constant 0 : index
    %c0_16 = arith.constant 0 : index
    %c0_17 = arith.constant 0 : index
    %23 = vector.load %arg11[%c0_15, %c0_16, %c0_17] : memref<1x2x256xbf16, #tpu.memory_space<vmem>>, vector<1x2x256xbf16>
    %24 = vector.shape_cast %23 : vector<1x2x256xbf16> to vector<2x256xbf16>
    %25 = vector.shape_cast %22 : vector<2x256xbf16> to vector<1x2x256xbf16>
    tpu.vector_store %arg11[%c0_15, %c0_16, %c0_17], %25 {strides = array<i32>} : memref<1x2x256xbf16, #tpu.memory_space<vmem>>, vector<1x2x256xbf16>,
    %c0_18 = arith.constant 0 : index
    %c0_19 = arith.constant 0 : index
    %26 = vector.load %arg6[%c0_18, %c0_19] : memref<32x32xf32, #tpu.memory_space<vmem>>, vector<32x32xf32>
    %27 = arith.truncf %26 : vector<32x32xf32> to vector<32x32xbf16>
    %cst_20 = arith.constant dense<0.000000e+00> : vector<32x256xf32>
    %28 = tpu.matmul %27, %2, %cst_20 {dimension_numbers = #tpu.dot_dimension_numbers<[1], [0], [0], [1], [0, 0, 1, 1], [], []>} : vector<32x32xbf16>, vector<32x256xbf16>, vector<32x256xf32> -> vector<32x256xf32>
    %c0_21 = arith.constant 0 : index
    %c0_22 = arith.constant 0 : index
    %29 = vector.load %arg7[%c0_21, %c0_22] : memref<32x1xf32, #tpu.memory_space<vmem>>, vector<32x1xf32>
    %30 = vector.broadcast %29 : vector<32x1xf32> to vector<32x256xf32>
    %31 = arith.addf %28, %30 : vector<32x256xf32>
    %c0_23 = arith.constant 0 : index
    %c0_24 = arith.constant 0 : index
    %32 = vector.load %arg8[%c0_23, %c0_24] : memref<32x32xf32, #tpu.memory_space<vmem>>, vector<32x32xf32>
    %33 = arith.truncf %32 : vector<32x32xf32> to vector<32x32xbf16>
    %cst_25 = arith.constant dense<0.000000e+00> : vector<32x256xf32>
    %34 = tpu.matmul %33, %5, %cst_25 {dimension_numbers = #tpu.dot_dimension_numbers<[1], [0], [0], [1], [0, 0, 1, 1], [], []>} : vector<32x32xbf16>, vector<32x256xbf16>, vector<32x256xf32> -> vector<32x256xf32>
    %c0_26 = arith.constant 0 : index
    %c0_27 = arith.constant 0 : index
    %35 = vector.load %arg9[%c0_26, %c0_27] : memref<32x1xf32, #tpu.memory_space<vmem>>, vector<32x1xf32>
    %36 = vector.broadcast %35 : vector<32x1xf32> to vector<32x256xf32>
    %37 = arith.addf %34, %36 : vector<32x256xf32>
    %38 = tpu.concatenate %31, %37 in 0 : vector<32x256xf32>, vector<32x256xf32> -> vector<64x256xf32>
    %39 = arith.truncf %38 : vector<64x256xf32> to vector<64x256xbf16>
    %c0_28 = arith.constant 0 : index
    %c0_29 = arith.constant 0 : index
    %c0_30 = arith.constant 0 : index
    %40 = vector.load %arg12[%c0_28, %c0_29, %c0_30] : memref<1x64x256xbf16, #tpu.memory_space<vmem>>, vector<1x64x256xbf16>
    %41 = vector.shape_cast %40 : vector<1x64x256xbf16> to vector<64x256xbf16>
    %42 = vector.shape_cast %39 : vector<64x256xbf16> to vector<1x64x256xbf16>
    tpu.vector_store %arg12[%c0_28, %c0_29, %c0_30], %42 {strides = array<i32>} : memref<1x64x256xbf16, #tpu.memory_space<vmem>>, vector<1x64x256xbf16>,
    return
  }
  func.func @transform_0(%arg0: i32) -> (i32, i32, i32) {
    %c0_i32 = arith.constant 0 : i32
    %c0_i32_0 = arith.constant 0 : i32
    %c0_i32_1 = arith.constant 0 : i32
    return %arg0, %c0_i32, %c0_i32_0 : i32, i32, i32
  }
  func.func @transform_1(%arg0: i32) -> (i32, i32, i32) {
    %c0_i32 = arith.constant 0 : i32
    %c0_i32_0 = arith.constant 0 : i32
    %c0_i32_1 = arith.constant 0 : i32
    return %arg0, %c0_i32, %c0_i32_0 : i32, i32, i32
  }
  func.func @transform_2(%arg0: i32) -> (i32, i32) {
    %c0_i32 = arith.constant 0 : i32
    %c0_i32_0 = arith.constant 0 : i32
    %c0_i32_1 = arith.constant 0 : i32
    return %c0_i32, %c0_i32_0 : i32, i32
  }
  func.func @transform_3(%arg0: i32) -> (i32, i32) {
    %c0_i32 = arith.constant 0 : i32
    %c0_i32_0 = arith.constant 0 : i32
    %c0_i32_1 = arith.constant 0 : i32
    return %c0_i32, %c0_i32_0 : i32, i32
  }
  func.func @transform_4(%arg0: i32) -> (i32, i32) {
    %c0_i32 = arith.constant 0 : i32
    %c0_i32_0 = arith.constant 0 : i32
    %c0_i32_1 = arith.constant 0 : i32
    return %c0_i32, %c0_i32_0 : i32, i32
  }
  func.func @transform_5(%arg0: i32) -> (i32, i32) {
    %c0_i32 = arith.constant 0 : i32
    %c0_i32_0 = arith.constant 0 : i32
    %c0_i32_1 = arith.constant 0 : i32
    return %c0_i32, %c0_i32_0 : i32, i32
  }
  func.func @transform_6(%arg0: i32) -> (i32, i32) {
    %c0_i32 = arith.constant 0 : i32
    %c0_i32_0 = arith.constant 0 : i32
    %c0_i32_1 = arith.constant 0 : i32
    return %c0_i32, %c0_i32_0 : i32, i32
  }
  func.func @transform_7(%arg0: i32) -> (i32, i32) {
    %c0_i32 = arith.constant 0 : i32
    %c0_i32_0 = arith.constant 0 : i32
    %c0_i32_1 = arith.constant 0 : i32
    return %c0_i32, %c0_i32_0 : i32, i32
  }
  func.func @transform_8(%arg0: i32) -> (i32, i32) {
    %c0_i32 = arith.constant 0 : i32
    %c0_i32_0 = arith.constant 0 : i32
    %c0_i32_1 = arith.constant 0 : i32
    return %c0_i32, %c0_i32_0 : i32, i32
  }
  func.func @transform_9(%arg0: i32) -> (i32, i32, i32) {
    %c0_i32 = arith.constant 0 : i32
    %c0_i32_0 = arith.constant 0 : i32
    %c0_i32_1 = arith.constant 0 : i32
    return %arg0, %c0_i32, %c0_i32_0 : i32, i32, i32
  }
  func.func @transform_10(%arg0: i32) -> (i32, i32, i32) {
    %c0_i32 = arith.constant 0 : i32
    %c0_i32_0 = arith.constant 0 : i32
    %c0_i32_1 = arith.constant 0 : i32
    return %arg0, %c0_i32, %c0_i32_0 : i32, i32, i32
  }
  func.func @transform_11(%arg0: i32) -> (i32, i32, i32) {
    %c0_i32 = arith.constant 0 : i32
    %c0_i32_0 = arith.constant 0 : i32
    %c0_i32_1 = arith.constant 0 : i32
    return %arg0, %c0_i32, %c0_i32_0 : i32, i32, i32
  }
}

</mosaic_0001>

<bundles_post_ra>
// kernel: tpu_custom_call.1
= control target key start
LH: loop header
LB: loop body
LE: loop exit
PB: predicated region body
PF: predicated region fallthrough
CT: control target
= control target key end

     0   :  { %s1698_s0 = inlined_call_operand.hbm [shape: f32[2,32,256], index: 0, kind: input, shape index: {}]   ;;  %s1699_s1 = inlined_call_operand.hbm [shape: f32[2,32,256], index: 1, kind: input, shape index: {}]   ;;  %s1700_s2 = inlined_call_operand.vmem [shape: f32[4,32], index: 2, kind: input, shape index: {}]   ;;  %s1701_s3 = inlined_call_operand.hbm [shape: f32[4,32], index: 3, kind: input, shape index: {}]   ;;  %s1702_s4 = inlined_call_operand.vmem [shape: f32[4,1], index: 4, kind: input, shape index: {}]   ;;  %s1703_s5 = inlined_call_operand.vmem [shape: f32[32,32], index: 5, kind: input, shape index: {}]   ;;  %s1704_s6 = inlined_call_operand.vmem [shape: f32[32,1], index: 6, kind: input, shape index: {}]   ;;  %s1705_s7 = inlined_call_operand.vmem [shape: f32[32,32], index: 7, kind: input, shape index: {}]   ;;  %s1706_s8 = inlined_call_operand.vmem [shape: f32[32,1], index: 8, kind: input, shape index: {}]   ;;  %s1707_s9 = inlined_call_operand.hbm [shape: bf16[2,2,256], index: 9, kind: output, shape index: {0}]   ;;  %s1708_s10 = inlined_call_operand.hbm [shape: bf16[2,2,256], index: 10, kind: output, shape index: {1}]   ;;  %s1709_s11 = inlined_call_operand.hbm [shape: bf16[2,64,256], index: 11, kind: output, shape index: {2}]  }
   0x1   :  { %1722 = sst [smem:[#allocation23_spill]] %s1698_s0 }
   0x2   :  { %1723 = sst [smem:[#allocation24_spill]] %s1701_s3 }
   0x3   :  { %1724 = sst [smem:[#allocation25_spill]] %s1707_s9 }
   0x4   :  { %1725 = sst [smem:[#allocation26_spill]] %s1708_s10 }
   0x5   :  { %1726 = sst [smem:[#allocation27_spill]] %s1709_s11 }
   0x6   :  { %17 = vsyncpa [#allocation3], 0 }
   0x7   :  { %19 = vsyncpa [#allocation3 + $0x1], 0 }
   0x8   :  { %20 = vsyncpa [#allocation6], 0 }
   0x9   :  { %22 = vsyncpa [#allocation6 + $0x1], 0 }
   0xa   :  { %23 = vsyncpa [#allocation4], 0 }
   0xb   :  { %25 = vsyncpa [#allocation4 + $0x1], 0 }
   0xc   :  { %26 = vsyncpa [#allocation10], 0 }
   0xd   :  { %28 = vsyncpa [#allocation10 + $0x1], 0  ;;  %s1390_s17 = smov 0   ;;  %s1392_s18 = smov 0  }
   0xe   :  { %s1394_s19 = smov 0   ;;  %s1396_s20 = smov 0  }
   0xf LB: > { %1727 = sst [smem:[#allocation17_spill]] %s1310_s17  ;;  %s1411_s21 = sadd.s32 4294967295, %s1322_s20   ;;  %s1322_s20 = sphi %s1396_s20, %s1750_s20   ;;  %s1318_s19 = sphi %s1394_s19, %s1752_s19   ;;  %s1314_s18 = sphi %s1392_s18, %s1754_s18   ;;  %s1310_s17 = sphi %s1390_s17, %s1753_s17  }
  0x10   : > { %1728 = sst [smem:[#allocation18_spill]] %s1318_s19  ;;  %s1710_s22 = sadd.s32 4294967294, %s1322_s20  }
  0x11   : > { %s1415_s23 = sadd.s32 1, %s1322_s20   ;;  %s41_s24 = sadd.s32 1, %s1318_s19 }
  0x12   : > { %1729 = sst [smem:[#allocation19_spill]] %s1415_s23  ;;  %s38_s25 = ssub.s32 %s1322_s20, %s1415_s23 }
  0x13   : > { %p48_p0 = scmp.ne.s32.totalorder %s1318_s19, %s1314_s18  ;;  %p39_p1 = scmp.eq.s32.totalorder %s38_s25, 0 }
  0x14   : > { %p49_p2 = scmp.eq.s32.totalorder %s1322_s20, 0  ;;  %p54_p3 = scmp.ne.s32.totalorder %s1314_s18, %s1310_s17 }
  0x15   : > { %p55_p4 = scmp.eq.s32.totalorder %s1411_s21, 0  ;;  %p251_p7 = scmp.eq.s32.totalorder %s1411_s21, 1 }
  0x16   : > { %s1427_s26 = scalar_select %p39_p1, %s1318_s19, %s41_s24  }
  0x17   : > { %p1429_p5 = por %p49_p2, %p48_p0  ;;  %p1435_p6 = por %p55_p4, %p54_p3 }
  0x18   : > { %1730 = sst [smem:[#allocation20_spill]] %s1427_s26  ;;  %p257_p8 = scmp.eq.s32.totalorder %s1710_s22, 1 }
  0x19   : > { %p978_p9 = scmp.ge.s32.totalorder %s1322_s20, 1  ;;  %p316_p10 = scmp.lt.s32.totalorder %s1322_s20, 3 }
  0x1a   : > { %p1444_p11 = por %p251_p7, %p48_p0  ;;  %p1448_p12 = por %p257_p8, %p54_p3 }
  0x1b   : > { %p1452_p13 = pnand %p978_p9, %p316_p10  ;;  %s1738_s3 = sld [smem:[#allocation24_spill]] }
  0x1c   : > { %s1733_s29 = scalar_select %p1444_p11, 1, 0 }
  0x1d   : > { %s1735_s30 = scalar_select %p1448_p12, 1, 0 }
  0x1e   : > { %1734 = sst [smem:[#allocation21_spill]] %s1733_s29  ;;  %p1032_p1 = pneg %p1452_p13 }
  0x1f   : > { %1736 = sst [smem:[#allocation22_spill]] %s1735_s30  ;;  %s1324_s16 = smov [#allocation7]  }
  0x20   : > { %s333_s24 = sshll.u32 %s1324_s16, 4  ;;  %p1033_p2 = pnand %p1032_p1, %p55_p4  ;;  %s334_s24 = int_to_ptr.vmem [resolvable:$true] %s333_s24 }
  0x21   : > { %s331_s15 = sshll.u32 %s1738_s3, 4  ;;  %p1054_p3 = scmp.lt.s32.totalorder %s1322_s20, 2  ;;  %s332_s15 = int_to_ptr.hbm [resolvable:$true] %s331_s15 }
  0x22   : > { %s359_s25 = sand.u32 1, %s1318_s19   ;;  %s1015_s14 = sshll.u32 %s1322_s20, 6 }
  0x23   : > { %1035 = dma.hbm_to_vmem [thread:$0]  (!%p1033_p2), %s332_s15, 64, %s334_s24, [#allocation6]  }
  0x24   : > { %p1468_p7 = pnand %p1054_p3, %p1429_p5  ;;  %s1472_s13 = sshll.u32 %s359_s25, 6 }
  0x25   : > { %s1740_s0 = sld [smem:[#allocation23_spill]]  ;;  %s363_s30 = scalar_lea.vmem [#allocation2], %s1472_s13 }
  0x26   : > { %s371_s17 = sshll.u32 %s363_s30, 4  ;;  %s360_s27 = scalar_lea.sflag [#allocation3], %s359_s25  ;;  %s372_s17 = int_to_ptr.vmem [resolvable:$true] %s371_s17 }
  0x27   : > { %p1132_p8 = pneg %p1468_p7 }
  0x2b   : > { %s368_s26 = scalar_lea.hbm %s1740_s0, %s1015_s14  ;;  %s1135_s3 = scalar_lea.hbm %s1740_s0, 128 }
  0x2c   : > { %s369_s23 = sshll.u32 %s368_s26, 4  ;;  %s370_s23 = int_to_ptr.hbm [resolvable:$true] %s369_s23 }
  0x2d   : > { %s1128_s15 = sshra.s32 %s370_s23, 4  ;;  %s1129_s15 = int_to_ptr.hbm [resolvable:$true] %s1128_s15 }
  0x2e   : > { %s1130_s24 = scalar_lea.hbm %s1129_s15, 64  ;;  %p1136_p1 = scmp.lt.s32.totalorder %s1129_s15, %s1740_s0 }
  0x2f   : > { %p1131_p5 = scmp.ne.s32.totalorder %s1129_s15, %s1130_s24  ;;  %p1137_p2 = scmp.lt.s32.totalorder %s1135_s3, %s1130_s24 }
  0x31   : > { %p1133_p9 = pnand %p1132_p8, %p1131_p5  ;;  %p1138_p3 = por %p1137_p2, %p1136_p1 }
  0x33   : > { %p1134_p10 = pneg %p1133_p9 }
  0x35   : > { %p1139_p0 = pnand %p1138_p3, %p1134_p10 }
  0x37   : > { %1142 = shalt.err (!%p1139_p0)
}
  0x38   : > { %s1325_s30 = smov 256   ;;  %s1326_s25 = smov 16  }
  0x39   : > { %1039 = dma.hbm_to_vmem [thread:$0]  (!%p1468_p7), %s370_s23, 1024, %s372_s17, %s360_s27, %s1325_s30, %s1325_s30, %s1326_s25  }
  0x3a   : > { %s390_s11 = scalar_lea.hbm %s1699_s1, %s1015_s14  ;;  %s385_s9 = scalar_lea.vmem [#allocation5], %s1472_s13 }
  0x3b   : > { %s391_s19 = sshll.u32 %s390_s11, 4  ;;  %s393_s26 = sshll.u32 %s385_s9, 4  ;;  %s392_s19 = int_to_ptr.hbm [resolvable:$true] %s391_s19  ;;  %s394_s26 = int_to_ptr.vmem [resolvable:$true] %s393_s26 }
  0x3c   : > { %s381_s15 = sand.u32 1, %s1322_s20   ;;  %s1158_s3 = sshra.s32 %s392_s19, 4  ;;  %s1159_s3 = int_to_ptr.hbm [resolvable:$true] %s1158_s3 }
  0x3d   : > { %s382_s24 = scalar_lea.sflag [#allocation6], %s381_s15  ;;  %s1160_s16 = scalar_lea.hbm %s1159_s3, 64 }
  0x3e   : > { %p1161_p0 = scmp.ne.s32.totalorder %s1159_s3, %s1160_s16  ;;  %s1165_s10 = scalar_lea.hbm %s1699_s1, 128 }
  0x3f   : > { %p1166_p10 = scmp.lt.s32.totalorder %s1159_s3, %s1699_s1  ;;  %p1167_p1 = scmp.lt.s32.totalorder %s1165_s10, %s1160_s16 }
  0x40   : > { %p1163_p5 = pnand %p1161_p0, %p1132_p8 }
  0x41   : > { %p1168_p2 = por %p1167_p1, %p1166_p10 }
  0x42   : > { %p1164_p9 = pneg %p1163_p5 }
  0x44   : > { %p1169_p3 = pnand %p1168_p2, %p1164_p9 }
  0x46   : > { %1172 = shalt.err (!%p1169_p3)
}
  0x47   : > { %1042 = dma.hbm_to_vmem [thread:$0]  (!%p1468_p7), %s392_s19, 1024, %s394_s26, %s382_s24, %s1325_s30, %s1325_s30, %s1326_s25  }
  0x48   : > { %405 = sbr.rel (%p1452_p13) target bundleno = 278 (0x116), region = 56  ;;  %s1511_s9 = sand.u32 (!%p1452_p13), 1, %s1314_s18  }
  0x49   : > { %s1514_s13 = sshll.u32 (!%p1452_p13), %s1511_s9, 6  ;;  %s408_s27 = scalar_lea.sflag (!%p1452_p13), [#allocation3], %s1511_s9 }
  0x4a   : > { %s1518_s11 = scalar_lea.vmem (!%p1452_p13), [#allocation2], %s1514_s13 }
  0x4d   : > { %1289 = dma.done.wait (%p1435_p6), %s408_s27, 1024  }
  0x4e   : > { %1291 = vsyncadd (%p1435_p6), %s408_s27, 4294966272  ;;  %s1721_s22 = sand.u32 1, %s1411_s21   ;;  %s421_s30 = scalar_lea.vmem [#allocation5], %s1514_s13 }
  0x4f   : > { %s418_s12 = scalar_lea.sflag [#allocation6], %s1721_s22 }
  0x50   : > { %1293 = dma.done.wait (%p1435_p6), %s418_s12, 1024  }
  0x51   : > { %1295 = vsyncadd (%p1435_p6), %s418_s12, 4294966272 }
  0x52   : > { %1297 = dma.done.wait (%p55_p4), [#allocation6], 64  }
  0x53   : > { %1299 = vsyncadd (%p55_p4), [#allocation6], 4294967232  ;;  %v1327_v0 = vmov 0   ;;  %v498_v1 = vld [vmem:[%s421_s30 + $0x20] sm:$0xff]  ;;  %v500_v2 = vld [vmem:[%s421_s30 + $0x30] sm:$0xff]  ;;  %vm510_vm0 = vcmask 261120  }
  0x54   : > { %1095 = vset.pattern.permute.xlu0 %v1327_v0  ;;  %1096 = vset.pattern.permute.xlu1 %v1327_v0  ;;  %v499_v3 = vld [vmem:[%s421_s30 + $0x28] sm:$0xff]  ;;  %v504_v4 = vpack.c.bf16 %v500_v2, %v498_v1  ;;  %v501_v5 = vld [vmem:[%s421_s30 + $0x38] sm:$0xff]  ;;  %v486_v6 = vld [vmem:[%s1518_s11 + $0x20] sm:$0xff]  ;;  %s1009_s19 = sshll.u32 %s1411_s21, 1  ;;  %s991_s26 = sshll.u32 %s1511_s9, 1  ;;  %vm580_vm1 = vcmask 1040384  }
  0x55   : > { %1097 = vset.pattern.permute.xlu2 %v1327_v0  ;;  %v488_v7 = vld [vmem:[%s1518_s11 + $0x30] sm:$0xff]  ;;  %v505_v8 = vpack.c.bf16 %v501_v5, %v499_v3  ;;  %v487_v10 = vld [vmem:[%s1518_s11 + $0x28] sm:$0xff]  ;;  %v489_v11 = vld [vmem:[%s1518_s11 + $0x38] sm:$0xff]  ;;  %s1741_s3 = sld [smem:[#allocation25_spill]]  ;;  %s466_s17 = scalar_lea.vmem [#allocation8], %s991_s26 }
  0x56   : > { %v492_v9 = vpack.c.bf16 %v488_v7, %v486_v6  ;;  %v494_v12 = vld [vmem:[%s421_s30] sm:$0xff]  ;;  %520 = vmatpush.bf16.msra.mxu0 %v504_v4  ;;  %v493_v13 = vpack.c.bf16 %v489_v11, %v487_v10  ;;  %v496_v14 = vld [vmem:[%s421_s30 + $0x10] sm:$0xff]  ;;  %v495_v15 = vld [vmem:[%s421_s30 + $0x8] sm:$0xff]  ;;  %s778_s23 = sshll.u32 %s466_s17, 4  ;;  %s1742_s27 = sld [smem:[#allocation26_spill]]  ;;  %s779_s23 = int_to_ptr.vmem [resolvable:$true] %s778_s23 }
  0x57   : > { %v497_v16 = vld [vmem:[%s421_s30 + $0x18] sm:$0xff]  ;;  %533 = vmatpush.bf16.msra.mxu1 %v505_v8  ;;  %v502_v17 = vpack.c.bf16 %v496_v14, %v494_v12  ;;  %v482_v19 = vld [vmem:[%s1518_s11] sm:$0xff]  ;;  %v484_v20 = vld [vmem:[%s1518_s11 + $0x10] sm:$0xff]  ;;  %s473_s30 = scalar_lea.vmem [#allocation9], %s991_s26  ;;  %s756_s15 = scalar_lea.sflag [#allocation4], %s1511_s9 }
  0x58   : > { %549 = vmatpush.bf16.msra.mxu2 %v492_v9  ;;  %v503_v18 = vpack.c.bf16 %v497_v16, %v495_v15  ;;  %v483_v21 = vld [vmem:[%s1518_s11 + $0x8] sm:$0xff]  ;;  %562 = vmatpush.bf16.msra.mxu3 %v493_v13  ;;  %v490_v22 = vpack.c.bf16 %v484_v20, %v482_v19  ;;  %v485_v23 = vld [vmem:[%s1518_s11 + $0x18] sm:$0xff]  ;;  %v508_v24 = vld [vmem:[#allocation7] sm:$0xf]  ;;  %s792_s28 = sshll.u32 %s473_s30, 4  ;;  %s793_s28 = int_to_ptr.vmem [resolvable:$true] %s792_s28 }
  0x59   : > { %v506_v25 = vld [vmem:[%s1700_s2] sm:$0xf]  ;;  %v491_v26 = vpack.c.bf16 %v485_v23, %v483_v21  ;;  %v509_v27 = vpack.c.bf16 %v508_v24, %v508_v24  ;;  %v598_v30 = vld [vmem:[%s1704_s6 + $0x8] sm:$0xff]  ;;  %v600_v31 = vld [vmem:[%s1704_s6 + $0x18] sm:$0xff] }
  0x5a   : > { %521 = vmatpush.bf16.msra.mxu0 %v502_v17  ;;  %v507_v28 = vpack.c.bf16 %v506_v25, %v506_v25  ;;  %v569_v29 = vld [vmem:[%s1702_s4] sm:$0xf]  ;;  %608 = vperm.xlu1 %1096, %v598_v30   ;;  %v592_v33 = vld [vmem:[%s1703_s5 + $0x8] sm:$0xff]  ;;  %v599_v37 = vld [vmem:[%s1704_s6 + $0x10] sm:$0xff] }
  0x5b   : > { %534 = vmatpush.bf16.msra.mxu1 %v503_v18  ;;  %572 = vperm.xlu0 %1095, %v569_v29   ;;  %v591_v32 = vld [vmem:[%s1703_s5] sm:$0xff]  ;;  %v666_v36 = vld [vmem:[%s1705_s7 + $0x8] sm:$0xff]  ;;  %v673_v42 = vld [vmem:[%s1706_s8 + $0x10] sm:$0xff]  ;;  %s776_s16 = scalar_lea.hbm %s1741_s3, %s1009_s19  ;;  %s1208_s14 = scalar_lea.hbm %s1741_s3, 4 }
  0x5c   : > { %550 = vmatpush.bf16.msra.mxu2 %v490_v22  ;;  %563 = vmatpush.bf16.msra.mxu3 %v491_v26  ;;  %v665_v34 = vld [vmem:[%s1705_s7] sm:$0xff]  ;;  %v595_v39 = vpack.c.bf16 %v592_v33, %v591_v32  ;;  %v672_v41 = vld [vmem:[%s1706_s8 + $0x8] sm:$0xff]  ;;  %v674_v43 = vld [vmem:[%s1706_s8 + $0x18] sm:$0xff]  ;;  %s780_s10 = sshll.u32 %s776_s16, 4  ;;  %s1620_s11 = scalar_lea.hbm %s1742_s27, %s1009_s19  ;;  %s781_s10 = int_to_ptr.hbm [resolvable:$true] %s780_s10 }
  0x5d   : > { %994 = vmatmul.msk.bf16.vlgmr.msra.gmra.mxu0 %vm510_vm0, %v509_v27  ;;  %618 = vperm.xlu2 %1097, %v600_v31   ;;  %v597_v35 = vld [vmem:[%s1704_s6] sm:$0xff]  ;;  %v669_v40 = vpack.c.bf16 %v666_v36, %v665_v34  ;;  %v593_v44 = vld [vmem:[%s1703_s5 + $0x10] sm:$0xff]  ;;  %v594_v45 = vld [vmem:[%s1703_s5 + $0x18] sm:$0xff]  ;;  %s794_s25 = sshll.u32 %s1620_s11, 4  ;;  %s1202_s24 = sshra.s32 %s781_s10, 4  ;;  %s1203_s24 = int_to_ptr.hbm [resolvable:$true] %s1202_s24  ;;  %s795_s25 = int_to_ptr.hbm [resolvable:$true] %s794_s25 }
  0x5e   : > { %995 = vmatmul.msk.bf16.vlgmr.msra.gmra.mxu1 %vm510_vm0, %v509_v27  ;;  %633 = vmatpush.bf16.msrb.mxu0 %v492_v9  ;;  %v671_v38 = vld [vmem:[%s1706_s8] sm:$0xff]  ;;  %v667_v46 = vld [vmem:[%s1705_s7 + $0x10] sm:$0xff]  ;;  %v668_v47 = vld [vmem:[%s1705_s7 + $0x18] sm:$0xff]  ;;  %v596_v48 = vpack.c.bf16 %v594_v45, %v593_v44  ;;  %s1204_s19 = scalar_lea.hbm %s1203_s24, 2  ;;  %p1209_p7 = scmp.lt.s32.totalorder %s1203_s24, %s1741_s3 }
  0x5f   : > { %996 = vmatmul.msk.bf16.vlgmr.msra.gmra.mxu2 %vm510_vm0, %v507_v28  ;;  %997 = vmatmul.msk.bf16.vlgmr.msra.gmra.mxu3 %vm510_vm0, %v507_v28  ;;  %v670_v49 = vpack.c.bf16 %v668_v47, %v667_v46  ;;  %p1205_p4 = scmp.ne.s32.totalorder %s1203_s24, %s1204_s19  ;;  %p1210_p8 = scmp.lt.s32.totalorder %s1208_s14, %s1204_s19 }
  0x60   : > { %707 = vmatpush.bf16.msrb.mxu2 %v504_v4  ;;  %726 = vmatpush.bf16.msrb.mxu3 %v505_v8 }
  0x61   : > { %652 = vmatpush.bf16.msrb.mxu1 %v493_v13  ;;  %p1206_p6 = pnand %p1205_p4, %p1444_p11  ;;  %p1211_p0 = por %p1210_p8, %p1209_p7 }
  0x62   : > { %634 = vmatpush.bf16.msrb.mxu0 %v490_v22  ;;  %613 = vperm.xlu1 %1096, %v599_v37  }
  0x63   : > { %603 = vperm.xlu0 %1095, %v597_v35   ;;  %p1207_p13 = pneg %p1206_p6 }
  0x64   : > { %708 = vmatpush.bf16.msrb.mxu2 %v502_v17  ;;  %727 = vmatpush.bf16.msrb.mxu3 %v503_v18 }
  0x65   : > { %653 = vmatpush.bf16.msrb.mxu1 %v491_v26  ;;  %677 = vperm.xlu2 %1097, %v671_v38   ;;  %p1212_p5 = pnand %p1211_p0, %p1207_p13 }
  0x6a   : > { %687 = vperm.xlu1 %1096, %v673_v42  }
  0x6b   : > { %682 = vperm.xlu0 %1095, %v672_v41  }
  0x6d   : > { %998 = vmatmul.msk.bf16.vlgmr.msrb.gmra.mxu0 %vm510_vm0, %v595_v39  ;;  %692 = vperm.xlu2 %1097, %v674_v43  }
  0x6e   : > { %1000 = vmatmul.msk.bf16.vlgmr.msrb.gmra.mxu1 %vm510_vm0, %v595_v39 }
  0x6f   : > { %1002 = vmatmul.msk.bf16.vlgmr.msrb.gmra.mxu2 %vm510_vm0, %v669_v40  ;;  %1004 = vmatmul.msk.bf16.vlgmr.msrb.gmra.mxu3 %vm510_vm0, %v669_v40 }
  0x7d   : > { %999 = vmatmul.msk.bf16.gmra.mxu0 %vm510_vm0, %v596_v48 }
  0x7e   : > { %1001 = vmatmul.msk.bf16.gmra.mxu1 %vm510_vm0, %v596_v48 }
  0x7f   : > { %1003 = vmatmul.msk.bf16.gmra.mxu2 %vm510_vm0, %v670_v49  ;;  %1005 = vmatmul.msk.bf16.gmra.mxu3 %vm510_vm0, %v670_v49 }
  0xb7   : > { %v1615_v61 = vpop.permute.xlu2 %618 }
  0xcc   : > { %v609_v8 = vpop.permute.xlu1 %608 }
  0xcd   : > { %v573_v52 = vpop.permute.xlu0 %572 }
  0xd5   : > { %v604_v63 = vpop.permute.xlu0 %603 }
  0xda   : > { %v523_v50 = vpop.f32.mrf.mxu0 }
  0xdb   : > { %v536_v51 = vpop.f32.mrf.mxu1 }
  0xe2   : > { %v552_v53 = vpop.f32.mrf.mxu2  ;;  %v565_v55 = vpop.f32.mrf.mxu3 }
  0xe3   : > { %v553_v54 = vadd.f32 %v552_v53, %v523_v50  ;;  %v525_v56 = vpop.f32.mrf.mxu0  ;;  %v566_v57 = vadd.f32 %v565_v55, %v536_v51  ;;  %v538_v58 = vpop.f32.mrf.mxu1 }
  0xe5   : > { %v575_v59 = vadd.f32 %v573_v52, %v553_v54  ;;  %v576_v60 = vadd.f32 %v573_v52, %v566_v57 }
  0xe7   : > { %v577_v62 = vpack.c.bf16 %v576_v60, %v575_v59 }
  0xe9   : > { %v579_v0 = vrot.slane %v577_v62, 3  ;;  %586 = vst [vmem:[#allocation1] sm:$0xff] %v577_v62 }
  0xea   : > { %v554_v1 = vpop.f32.mrf.mxu2  ;;  %v567_v2 = vpop.f32.mrf.mxu3 }
  0xeb   : > { %v636_v3 = vpop.f32.mrf.mxu0  ;;  %v655_v4 = vpop.f32.mrf.mxu1  ;;  %v583_v6 = vsel %vm580_vm1, %v577_v62, %v579_v0 }
  0xec   : > { %v637_v5 = vadd.f32 %v636_v3, %v604_v63  ;;  %v656_v7 = vadd.f32 %v655_v4, %v604_v63  ;;  %585 = vst [vmem:[%s466_s17] sm:$0x3] %v583_v6 }
  0xed   : > { %1215 = shalt.err (!%p1212_p5)
}
  0xee   : > { %1026 = dma.vmem_to_hbm [thread:$0]  (%p1444_p11), %s779_s23, 32, %s781_s10, %s756_s15   ;;  %v739_v9 = vpack.c.bf16 %v656_v7, %v637_v5  ;;  %v678_v10 = vpop.permute.xlu2 %677 }
  0xef   : > { %s1635_s9 = scalar_lea.vmem [#allocation11], %s1514_s13  ;;  %s1744_s0 = sand.u32 1, %s1411_s21  }
  0xf0   : > { %747 = vst [vmem:[%s1635_s9] sm:$0xff] %v739_v9  ;;  %v588_v11 = vld [vmem:[#allocation1 + $0x1] ss:$4 sm:$0xff]  ;;  %s1640_s22 = scalar_lea.sflag [#allocation10], %s1744_s0  ;;  %s1230_s26 = sshra.s32 %s795_s25, 4  ;;  %s1231_s26 = int_to_ptr.hbm [resolvable:$true] %s1230_s26 }
  0xf1   : > { %590 = vst [vmem:[%s473_s30] sm:$0x3] %v588_v11  ;;  %s1232_s17 = scalar_lea.hbm %s1231_s26, 2  ;;  %s1236_s10 = scalar_lea.hbm %s1742_s27, 4 }
  0xf2   : > { %v710_v12 = vpop.f32.mrf.mxu2  ;;  %v729_v14 = vpop.f32.mrf.mxu3  ;;  %p1233_p9 = scmp.ne.s32.totalorder %s1231_s26, %s1232_s17  ;;  %p1237_p2 = scmp.lt.s32.totalorder %s1231_s26, %s1742_s27 }
  0xf3   : > { %v711_v13 = vadd.f32 %v710_v12, %v678_v10  ;;  %v638_v15 = vpop.f32.mrf.mxu0  ;;  %p1238_p3 = scmp.lt.s32.totalorder %s1236_s10, %s1232_s17 }
  0xf4   : > { %p1234_p10 = pnand %p1233_p9, %p1444_p11 }
  0xf5   : > { %p1239_p4 = por %p1238_p3, %p1237_p2 }
  0xf6   : > { %p1235_p1 = pneg %p1234_p10 }
  0xf8   : > { %p1240_p6 = pnand %p1239_p4, %p1235_p1 }
  0xfa   : > { %1243 = shalt.err (!%p1240_p6)
}
  0xfb   : > { %1027 = dma.vmem_to_hbm [thread:$0]  (%p1444_p11), %s793_s28, 32, %s795_s25, %s1640_s22   ;;  %v730_v16 = vadd.f32 %v729_v14, %v678_v10  ;;  %v639_v17 = vadd.f32 %v638_v15, %v609_v8  ;;  %v657_v18 = vpop.f32.mrf.mxu1  ;;  %v614_v22 = vpop.permute.xlu1 %613 }
  0xfc   : > { %v658_v19 = vadd.f32 %v657_v18, %v609_v8  ;;  %v683_v23 = vpop.permute.xlu0 %682  ;;  %v712_v24 = vpop.f32.mrf.mxu2  ;;  %s1017_s30 = sshll.u32 %s1411_s21, 6  ;;  %s1745_s24 = sld [smem:[#allocation27_spill]] }
  0xfd   : > { %v743_v20 = vpack.c.bf16 %v730_v16, %v711_v13  ;;  %v713_v25 = vadd.f32 %v712_v24, %v683_v23  ;;  %v731_v26 = vpop.f32.mrf.mxu3  ;;  %v641_v27 = vpop.f32.mrf.mxu0  ;;  %s806_s16 = sshll.u32 %s1635_s9, 4  ;;  %s807_s16 = int_to_ptr.vmem [resolvable:$true] %s806_s16 }
  0xfe   : > { %v740_v21 = vpack.c.bf16 %v658_v19, %v639_v17  ;;  %v732_v28 = vadd.f32 %v731_v26, %v683_v23  ;;  %v642_v29 = vadd.f32 %v641_v27, %v614_v22  ;;  %v693_v45 = vpop.permute.xlu2 %692 }
  0xff   : > { %751 = vst [vmem:[%s1635_s9 + $0x20] sm:$0xff] %v743_v20 }
 0x100   : > { %748 = vst [vmem:[%s1635_s9 + $0x8] sm:$0xff] %v740_v21  ;;  %v744_v32 = vpack.c.bf16 %v732_v28, %v713_v25 }
 0x102   : > { %752 = vst [vmem:[%s1635_s9 + $0x28] sm:$0xff] %v744_v32  ;;  %s805_s19 = scalar_lea.hbm %s1745_s24, %s1017_s30  ;;  %s1264_s17 = scalar_lea.hbm %s1745_s24, 128 }
 0x103   : > { %v660_v30 = vpop.f32.mrf.mxu1  ;;  %v688_v34 = vpop.permute.xlu1 %687  ;;  %s808_s29 = sshll.u32 %s805_s19, 4  ;;  %s809_s29 = int_to_ptr.hbm [resolvable:$true] %s808_s29 }
 0x104   : > { %v661_v31 = vadd.f32 %v660_v30, %v614_v22  ;;  %v715_v35 = vpop.f32.mrf.mxu2  ;;  %s1258_s21 = sshra.s32 %s809_s29, 4  ;;  %s1259_s21 = int_to_ptr.hbm [resolvable:$true] %s1258_s21 }
 0x105   : > { %v716_v36 = vadd.f32 %v715_v35, %v688_v34  ;;  %v734_v37 = vpop.f32.mrf.mxu3  ;;  %v643_v38 = vpop.f32.mrf.mxu0  ;;  %s1260_s14 = scalar_lea.hbm %s1259_s21, 64  ;;  %p1265_p0 = scmp.lt.s32.totalorder %s1259_s21, %s1745_s24 }
 0x106   : > { %v741_v33 = vpack.c.bf16 %v661_v31, %v642_v29  ;;  %v735_v39 = vadd.f32 %v734_v37, %v688_v34  ;;  %v644_v40 = vadd.f32 %v643_v38, %v1615_v61  ;;  %p1261_p13 = scmp.ne.s32.totalorder %s1259_s21, %s1260_s14  ;;  %p1266_p5 = scmp.lt.s32.totalorder %s1264_s17, %s1260_s14 }
 0x108   : > { %749 = vst [vmem:[%s1635_s9 + $0x10] sm:$0xff] %v741_v33  ;;  %v745_v43 = vpack.c.bf16 %v735_v39, %v716_v36  ;;  %p1262_p7 = pnand %p1261_p13, %p1444_p11  ;;  %p1267_p9 = por %p1266_p5, %p1265_p0 }
 0x10a   : > { %753 = vst [vmem:[%s1635_s9 + $0x30] sm:$0xff] %v745_v43  ;;  %p1263_p8 = pneg %p1262_p7 }
 0x10b   : > { %v662_v41 = vpop.f32.mrf.mxu1 }
 0x10c   : > { %v663_v42 = vadd.f32 %v662_v41, %v1615_v61  ;;  %v717_v46 = vpop.f32.mrf.mxu2  ;;  %p1268_p10 = pnand %p1267_p9, %p1263_p8 }
 0x10d   : > { %v718_v47 = vadd.f32 %v717_v46, %v693_v45  ;;  %v736_v48 = vpop.f32.mrf.mxu3 }
 0x10e   : > { %v742_v44 = vpack.c.bf16 %v663_v42, %v644_v40  ;;  %v737_v49 = vadd.f32 %v736_v48, %v693_v45 }
 0x110   : > { %750 = vst [vmem:[%s1635_s9 + $0x18] sm:$0xff] %v742_v44  ;;  %v746_v50 = vpack.c.bf16 %v737_v49, %v718_v47 }
 0x112   : > { %754 = vst [vmem:[%s1635_s9 + $0x38] sm:$0xff] %v746_v50 }
 0x113   : > { %1271 = shalt.err (!%p1268_p10)
}
 0x114   : > { %s1328_s9 = smov 128   ;;  %s1329_s10 = smov 8  }
 0x115   : > { %1028 = dma.vmem_to_hbm [thread:$0]  (%p1444_p11), %s807_s16, 1024, %s809_s29, %s1640_s22, %s1328_s9, %s1328_s9, %s1329_s10  }
 0x116 PF: > { %s1746_s11 = sld [smem:[#allocation17_spill]]  ;;  %p1748_p1 = scmp.ge.s32.totalorder %s1322_s20, 2 }
 0x118   : > { %p1044_p2 = pnand %p1748_p1, %p1448_p12 }
 0x11a   : > { %p1045_p3 = pneg %p1044_p2 }
 0x11c   : > { %s823_s30 = sand.u32 1, %s1746_s11  }
 0x11d   : > { %s824_s28 = scalar_lea.sflag [#allocation4], %s823_s30 }
 0x11e   : > { %1301 = dma.done.wait (%p1045_p3), %s824_s28, 32  }
 0x11f   : > { %1303 = vsyncadd (%p1045_p3), %s824_s28, 4294967264  ;;  %s1749_s25 = sadd.s32 4294967294, %s1322_s20  }
 0x120   : > { %s833_s19 = sand.u32 1, %s1749_s25  }
 0x121   : > { %s834_s21 = scalar_lea.sflag [#allocation10], %s833_s19 }
 0x122   : > { %1305 = dma.done.wait (%p1045_p3), %s834_s21, 1056  }
 0x123   : > { %1307 = vsyncadd (%p1045_p3), %s834_s21, 4294966240  ;;  %s1750_s20 = sld [smem:[#allocation19_spill]]  ;;  %s1753_s17 = smov %s1314_s18 }
 0x124   : > { %s1751_s12 = sld [smem:[#allocation18_spill]] }
 0x125   : > { %s1752_s19 = sld [smem:[#allocation20_spill]] }
 0x129   : > { %p31_p11 = scmp.ge.s32.totalorder %s1750_s20, 4  }
 0x12a   : > { %s1754_s18 = smov %s1751_s12 }
 0x12b   :  { %33 = sbr.rel (!%p31_p11) target bundleno = 15 (0xf), region = 151 }
 0x130   :  { %850 = vsyncpa [#allocation3], 1 }
 0x131   :  { %852 = vsyncpa [#allocation3 + $0x1], 1 }
 0x132   :  { %853 = vsyncpa [#allocation6], 1 }
 0x133   :  { %855 = vsyncpa [#allocation6 + $0x1], 1 }
 0x134   :  { %856 = vsyncpa [#allocation4], 1 }
 0x135   :  { %858 = vsyncpa [#allocation4 + $0x1], 1 }
 0x136   :  { %859 = vsyncpa [#allocation10], 1 }
 0x137   :  { %861 = vsyncpa [#allocation10 + $0x1], 1 }

</bundles_post_ra>
